<compile_context>
chip_gen: v5e
topology: v5e:2x2
jax: 0.10.0
libtpu: 0.0.40
codegen_flags: <defaults>
</compile_context>

<pallas_src>
import functools
import math

import jax
import jax.numpy as jnp
from jax.experimental import pallas as pl
from jax.experimental.pallas import tpu as pltpu


# ---------------------------------------------------------------------------
# Kernels
# ---------------------------------------------------------------------------

def _simple_kernel(x_ref, f_ref, o_ref, *, half_dim):
    # x_ref: (TB, 1) f32 | f_ref: (1, half_dim) f32 | o_ref: (TB, 2*half_dim) f32
    emb = x_ref[...] * f_ref[...]                       # (TB, half_dim) VPU broadcast-mul
    if half_dim % 128 == 0:
        # Lane-aligned halves: two direct unmasked lane-dense stores, no
        # (TB, dim) concat temporary / extra VMEM pass over the tile.
        o_ref[:, :half_dim] = jnp.sin(emb)
        o_ref[:, half_dim:] = jnp.cos(emb)
    else:
        # Lane-unaligned halves: keep one full-tile store via concat rather
        # than two masked sub-128-lane sliced stores.
        o_ref[...] = jnp.concatenate([jnp.sin(emb), jnp.cos(emb)], axis=-1)


def _packed_kernel(x_ref, e_ref, f_ref, o_ref, *, dim, half_dim):
    # Small-dim path: k = 128 // dim original rows per kernel "super-row".
    #   x_ref: (TB, k)      f32  timesteps (k rows packed per super-row)
    #   e_ref: (k, k*dim)   f32  expander: E[j, j*dim:(j+1)*dim] = 1
    #   f_ref: (1, k*dim)   f32  tiled freqs: per dim-group [freqs | freqs]
    #   o_ref: (TB, k*dim)  f32  lane-dense packed output (k*dim == 128)
    # Broadcast x[b, j] across its dim-lane group on the otherwise-idle MXU.
    xb = jnp.dot(x_ref[...], e_ref[...], preferred_element_type=jnp.float32)
    emb = xb * f_ref[...]
    lane = jax.lax.broadcasted_iota(jnp.int32, emb.shape, 1)
    is_sin = (lane % dim) < half_dim
    o_ref[...] = jnp.where(is_sin, jnp.sin(emb), jnp.cos(emb))


# ---------------------------------------------------------------------------
# Wrapper
# ---------------------------------------------------------------------------

def _tile_rows(rows, width):
    """TB: multiple of 8, <= 2048 rows (lane-padded (TB, small) input buffers),
    output blocks capped at ~2 MiB (width*TB*4 <= 2 MiB)."""
    byte_cap = max(8, ((1 << 19) // max(width, 1)) // 8 * 8)
    return max(8, min(((rows + 7) // 8) * 8, 2048, byte_cap))


def sinusoidal_pos_emb(x, dim, num_steps=4000, rescale_steps=4000):
    """Pallas-backed equivalent of SinusoidalPosEmb.forward.

    x: (B,) array of timesteps.  Returns (B, dim) float32.
    """
    assert dim % 2 == 0 and dim >= 4, "dim must be even and >= 4 (half_dim-1 > 0)"
    (B,) = x.shape
    half_dim = dim // 2

    # Same op order as the PyTorch module: optional rescale, then f32 math.
    if num_steps != rescale_steps:
        x = x / float(num_steps) * float(rescale_steps)
    x = x.astype(jnp.float32)

    # Trace-time constant frequencies (bit-identical to the reference).
    freqs = jnp.exp(
        jnp.arange(half_dim, dtype=jnp.float32)
        * -(math.log(10000.0) / (half_dim - 1))
    )

    params = pltpu.CompilerParams(dimension_semantics=("parallel",))

    k = (128 // dim) if dim < 128 else 0
    use_packed = (dim < 128) and (128 % dim == 0) and (k > 1) and (B % k == 0)

    if use_packed:
        # Lane-dense packed layout: k rows per (TB, 128) super-row.
        R = B // k
        x2 = x.reshape(R, k)
        expander = jnp.repeat(jnp.eye(k, dtype=jnp.float32), dim, axis=1)   # (k, k*dim)
        group = jnp.concatenate([freqs, freqs])                             # (dim,)
        f_tiled = jnp.tile(group, k).reshape(1, k * dim)                    # (1, k*dim)

        TB = _tile_rows(R, k * dim)
        out = pl.pallas_call(
            functools.partial(_packed_kernel, dim=dim, half_dim=half_dim),
            out_shape=jax.ShapeDtypeStruct((R, k * dim), jnp.float32),
            grid=(pl.cdiv(R, TB),),
            in_specs=[
                pl.BlockSpec((TB, k), lambda i: (i, 0)),          # per-block timesteps
                pl.BlockSpec((k, k * dim), lambda i: (0, 0)),     # resident expander
                pl.BlockSpec((1, k * dim), lambda i: (0, 0)),     # resident tiled freqs
            ],
            out_specs=pl.BlockSpec((TB, k * dim), lambda i: (i, 0)),
            compiler_params=params,
            cost_estimate=pl.CostEstimate(
                flops=2 * B * dim,
                transcendentals=2 * B * dim,
                bytes_accessed=B * dim * 4 + B * 4 + 2 * k * dim * 4,
            ),
        )(x2, expander, f_tiled)
        # Row-major contiguous -> free metadata reshape, no extra HBM pass.
        return out.reshape(B, dim)

    # General path: 1-D grid over the batch; partial last block handled by
    # Pallas masking (no pad + out[:B] copy).
    x2 = x.reshape(B, 1)
    f2 = freqs.reshape(1, half_dim)
    TB = _tile_rows(B, dim)
    out = pl.pallas_call(
        functools.partial(_simple_kernel, half_dim=half_dim),
        out_shape=jax.ShapeDtypeStruct((B, dim), jnp.float32),
        grid=(pl.cdiv(B, TB),),
        in_specs=[
            pl.BlockSpec((TB, 1), lambda i: (i, 0)),              # per-block timesteps
            pl.BlockSpec((1, half_dim), lambda i: (0, 0)),        # resident freqs
        ],
        out_specs=pl.BlockSpec((TB, dim), lambda i: (i, 0)),
        compiler_params=params,
        cost_estimate=pl.CostEstimate(
            flops=B * dim,
            transcendentals=B * dim,
            bytes_accessed=B * dim * 4 + B * 4 + half_dim * 4,
        ),
    )(x2, f2)
    return out


def _reference(x, dim, num_steps=4000, rescale_steps=4000):
    # Pure-JAX reference mirroring the PyTorch module exactly.
    if num_steps != rescale_steps:
        x = x / num_steps * rescale_steps
    half_dim = dim // 2
    emb = math.log(10000.0) / (half_dim - 1)
    emb = jnp.exp(jnp.arange(half_dim, dtype=jnp.float32) * -emb)
    emb = x[:, None].astype(jnp.float32) * emb[None, :]
    return jnp.concatenate([jnp.sin(emb), jnp.cos(emb)], axis=-1)


if __name__ == "__main__":
    key = jax.random.PRNGKey(0)

    # Case 1: dim << 128 -> packed lane-dense path (B divisible by k=128//dim).
    B1, dim1 = 8, 32
    x1 = jax.random.uniform(key, (B1,), dtype=jnp.float32) * 4000.0
    out1 = jax.block_until_ready(sinusoidal_pos_emb(x1, dim1))
    ref1 = _reference(x1, dim1)
    assert out1.shape == (B1, dim1), out1.shape
    err1 = float(jnp.max(jnp.abs(out1 - ref1)))
    # sin/cos args reach ~4e3; f32 range reduction may differ by a few ulps of
    # the argument, so use an absolute tolerance on outputs bounded in [-1, 1].
    assert err1 < 5e-3, f"case1 mismatch (max abs err {err1})"

    # Case 2: B not a multiple of the packing/tile -> general path with a
    # masked partial last block (no pad, no out[:B] slice).
    B2, dim2 = 10, 32
    x2 = jax.random.uniform(jax.random.fold_in(key, 1), (B2,), dtype=jnp.float32) * 4000.0
    out2 = jax.block_until_ready(sinusoidal_pos_emb(x2, dim2))
    ref2 = _reference(x2, dim2)
    assert out2.shape == (B2, dim2), out2.shape
    err2 = float(jnp.max(jnp.abs(out2 - ref2)))
    assert err2 < 5e-3, f"case2 mismatch (max abs err {err2})"

    # Case 3: 128-aligned half_dim -> direct unmasked half stores.
    B3, dim3 = 6, 256
    x3 = jax.random.uniform(jax.random.fold_in(key, 2), (B3,), dtype=jnp.float32) * 4000.0
    out3 = jax.block_until_ready(sinusoidal_pos_emb(x3, dim3))
    ref3 = _reference(x3, dim3)
    err3 = float(jnp.max(jnp.abs(out3 - ref3)))
    assert err3 < 5e-3, f"case3 mismatch (max abs err {err3})"

    # Small-timestep check: tiny args -> both implementations agree tightly
    # (guards against real bugs the loose 5e-3 tolerance could mask).
    x4 = jax.random.uniform(jax.random.fold_in(key, 3), (8,), dtype=jnp.float32) * 4.0
    out4 = jax.block_until_ready(sinusoidal_pos_emb(x4, 32))
    ref4 = _reference(x4, 32)
    err4 = float(jnp.max(jnp.abs(out4 - ref4)))
    assert err4 < 1e-4, f"small-timestep mismatch (max abs err {err4})"

    print("KERNEL_OK")
</pallas_src>

<mosaic_0001>
module attributes {stable_mosaic.version = 11 : i64} {
  func.func @_packed_kernel(%arg0: i32, %arg1: memref<8x4xf32, #tpu.memory_space<vmem>>, %arg2: memref<4x128xf32, #tpu.memory_space<vmem>>, %arg3: memref<1x128xf32, #tpu.memory_space<vmem>>, %arg4: memref<8x128xf32, #tpu.memory_space<vmem>>) attributes {dimension_semantics = [#tpu.dimension_semantics<parallel>], iteration_bounds = array<i64: 1>, scalar_prefetch = 0 : i64, scratch_operands = 0 : i64, tpu.core_type = #tpu.core_type<tc>, window_params = [{transform_indices = @transform_0, window_bounds = array<i64: 8, 4>}, {pipeline_mode = #tpu.pipeline_mode<synchronous>, transform_indices = @transform_1, window_bounds = array<i64: 4, 128>}, {pipeline_mode = #tpu.pipeline_mode<synchronous>, transform_indices = @transform_2, window_bounds = array<i64: 1, 128>}, {transform_indices = @transform_3, window_bounds = array<i64: 8, 128>}]} {
    %c0 = arith.constant 0 : index
    %c0_0 = arith.constant 0 : index
    %0 = vector.load %arg1[%c0, %c0_0] : memref<8x4xf32, #tpu.memory_space<vmem>>, vector<8x4xf32>
    %c0_1 = arith.constant 0 : index
    %c0_2 = arith.constant 0 : index
    %1 = vector.load %arg2[%c0_1, %c0_2] : memref<4x128xf32, #tpu.memory_space<vmem>>, vector<4x128xf32>
    %cst = arith.constant dense<0.000000e+00> : vector<8x128xf32>
    %2 = tpu.matmul %0, %1, %cst {dimension_numbers = #tpu.dot_dimension_numbers<[1], [0], [0], [1], [0, 0, 1, 1], [], []>} : vector<8x4xf32>, vector<4x128xf32>, vector<8x128xf32> -> vector<8x128xf32>
    %c0_3 = arith.constant 0 : index
    %c0_4 = arith.constant 0 : index
    %3 = vector.load %arg3[%c0_3, %c0_4] : memref<1x128xf32, #tpu.memory_space<vmem>>, vector<1x128xf32>
    %4 = vector.broadcast %3 : vector<1x128xf32> to vector<8x128xf32>
    %5 = arith.mulf %2, %4 : vector<8x128xf32>
    %6 = tpu.iota {dimensions = array<i32: 1>} : vector<8x128xi32>
    %c32_i32 = arith.constant 32 : i32
    %c0_i32 = arith.constant 0 : i32
    %7 = arith.cmpi eq, %c32_i32, %c0_i32 : i32
    %c1_i32 = arith.constant 1 : i32
    %8 = arith.select %7, %c1_i32, %c32_i32 : i32
    %9 = vector.broadcast %8 : i32 to vector<8x128xi32>
    %10 = arith.remsi %6, %9 : vector<8x128xi32>
    %c0_i32_5 = arith.constant 0 : i32
    %11 = vector.broadcast %c0_i32_5 : i32 to vector<8x128xi32>
    %12 = arith.cmpi ne, %10, %11 : vector<8x128xi32>
    %c0_i32_6 = arith.constant 0 : i32
    %13 = vector.broadcast %c0_i32_6 : i32 to vector<8x128xi32>
    %14 = arith.cmpi slt, %10, %13 : vector<8x128xi32>
    %c0_i32_7 = arith.constant 0 : i32
    %15 = arith.cmpi slt, %8, %c0_i32_7 : i32
    %16 = vector.broadcast %15 : i1 to vector<8x128xi1>
    %17 = vector.broadcast %16 : vector<8x128xi1> to vector<8x128xi1>
    %18 = arith.xori %14, %17 : vector<8x128xi1>
    %19 = arith.andi %18, %12 : vector<8x128xi1>
    %20 = vector.broadcast %8 : i32 to vector<8x128xi32>
    %21 = arith.addi %10, %20 : vector<8x128xi32>
    %22 = arith.select %19, %21, %10 : vector<8x128xi1>, vector<8x128xi32>
    %c16_i32 = arith.constant 16 : i32
    %23 = vector.broadcast %c16_i32 : i32 to vector<8x128xi32>
    %24 = arith.cmpi slt, %22, %23 : vector<8x128xi32>
    %25 = math.sin %5 : vector<8x128xf32>
    %26 = math.cos %5 : vector<8x128xf32>
    %27 = arith.select %24, %25, %26 : vector<8x128xi1>, vector<8x128xf32>
    %c0_8 = arith.constant 0 : index
    %c0_9 = arith.constant 0 : index
    %28 = vector.load %arg4[%c0_8, %c0_9] : memref<8x128xf32, #tpu.memory_space<vmem>>, vector<8x128xf32>
    tpu.vector_store %arg4[%c0_8, %c0_9], %27 {strides = array<i32>} : memref<8x128xf32, #tpu.memory_space<vmem>>, vector<8x128xf32>,
    return
  }
  func.func @transform_0(%arg0: i32) -> (i32, i32) {
    %c0_i32 = arith.constant 0 : i32
    %c0_i32_0 = arith.constant 0 : i32
    return %arg0, %c0_i32 : i32, i32
  }
  func.func @transform_1(%arg0: i32) -> (i32, i32) {
    %c0_i32 = arith.constant 0 : i32
    %c0_i32_0 = arith.constant 0 : i32
    %c0_i32_1 = arith.constant 0 : i32
    return %c0_i32, %c0_i32_0 : i32, i32
  }
  func.func @transform_2(%arg0: i32) -> (i32, i32) {
    %c0_i32 = arith.constant 0 : i32
    %c0_i32_0 = arith.constant 0 : i32
    %c0_i32_1 = arith.constant 0 : i32
    return %c0_i32, %c0_i32_0 : i32, i32
  }
  func.func @transform_3(%arg0: i32) -> (i32, i32) {
    %c0_i32 = arith.constant 0 : i32
    %c0_i32_0 = arith.constant 0 : i32
    return %arg0, %c0_i32 : i32, i32
  }
}

</mosaic_0001>

<bundles_post_ra>
// kernel: tpu_custom_call.1
= control target key start
LH: loop header
LB: loop body
LE: loop exit
PB: predicated region body
PF: predicated region fallthrough
CT: control target
= control target key end

     0   :  { %8 = vsyncpa [#allocation3], 0  ;;  %s637_s0 = inlined_call_operand.hbm [shape: f32[2,4], index: 0, kind: input, shape index: {}]   ;;  %s638_s1 = inlined_call_operand.hbm [shape: f32[4,128], index: 1, kind: input, shape index: {}]   ;;  %s639_s2 = inlined_call_operand.vmem [shape: f32[1,128], index: 2, kind: input, shape index: {}]   ;;  %s640_s3 = inlined_call_operand.hbm [shape: f32[2,128], index: 3, kind: output, shape index: {}]  }
   0x1   :  { %9 = vsyncpa [#allocation6], 0 }
   0x2   :  { %10 = vsyncpa [#allocation4], 0 }
   0x3   :  { %14 = vsyncadd [#allocation3], 96  ;;  %s15_s14 = sshll.u32 %s637_s0, 4  ;;  %s525_s15 = smov [#allocation2]   ;;  %s16_s14 = int_to_ptr.hbm [resolvable:$true] %s15_s14 }
   0x4   :  { %s17_s16 = sshll.u32 %s525_s15, 4  ;;  %s29_s19 = sshll.u32 %s638_s1, 4  ;;  %s18_s16 = int_to_ptr.vmem [resolvable:$true] %s17_s16  ;;  %s30_s19 = int_to_ptr.hbm [resolvable:$true] %s29_s19 }
   0x5   :  { %s526_s20 = smov 32   ;;  %s527_s21 = smov 2  }
   0x6   :  { %23 = dma.hbm_to_vmem [thread:$0]  %s16_s14, 32, %s18_s16, [#allocation3], %s526_s20, %s526_s20, %s527_s21  }
   0x7   :  { %s528_s22 = smov [#allocation5]  }
   0x8   :  { %s31_s23 = sshll.u32 %s528_s22, 4  ;;  %s32_s23 = int_to_ptr.vmem [resolvable:$true] %s31_s23 }
   0x9   :  { %34 = dma.hbm_to_vmem [thread:$0]  %s30_s19, 64, %s32_s23, [#allocation6]  }
   0xa   :  { %519 = dma.done.wait [#allocation3], 128  }
   0xb   :  { %520 = vsyncadd [#allocation3], 4294967168 }
   0xc   :  { %521 = dma.done.wait [#allocation6], 64  }
   0xd   :  { %522 = vsyncadd [#allocation6], 4294967232  ;;  %vm51_vm0 = vcmask 1043456   ;;  %vm47_vm1 = vcmask 31744   ;;  %v46_v0 = vld [vmem:[#allocation5] sm:$0xf] }
   0xe   :  { %v45_v1 = vld [vmem:[#allocation2] sm:$0xff]  ;;  %426 = vmatpush.msk.msra.mxu0 %vm51_vm0, %v46_v0  ;;  %v529_v16 = vmov 683565275   ;;  %v530_v18 = vmov 2475754826   ;;  %v535_v0 = vmov 0  }
   0xf   :  { %427 = vmatmul.msk.f32.vlgmr.msra.gmra.mxu0 %vm47_vm1, %v45_v1  ;;  %v446_v2 = vld [vmem:[%s639_s2] ss:$0 sm:$0xff]  ;;  %v531_v21 = vmov 2131351028   ;;  %v532_v24 = vmov 2102212464  }
  0x10   :  { %v533_v27 = vmov 920167782   ;;  %v534_v30 = vmov 1326507024  }
  0x8c   :  { %v72_v3 = vpop.f32.mrf.mxu0 }
  0x8d   :  { %v569_v4 = vmul.f32 %v446_v2, %v72_v3 }
  0x8f   :  { %v98_v5 = vand.u32 2139095040, %v569_v4  ;;  %v95_v8 = vand.u32 2147483647, %v569_v4  ;;  %vm97_vm14 = vcmp.lt.s32.totalorder %v569_v4, 0 }
  0x91   :  { %v99_v6 = vshrl.u32 %v98_v5, 23  ;;  %v102_v10 = vand.u32 8388607, %v95_v8  ;;  %vm96_vm15 = vcmp.le.f32.partialorder %v95_v8, 0.7853982 }
  0x93   :  { %v428_v7 = vadd.s32 4294967169, %v99_v6  ;;  %v103_v14 = vor.u32 8388608, %v102_v10 }
  0x95   :  { %v105_v9 = vadd.s32 1, %v428_v7  ;;  %v586_v37 = vshll.u32 %v103_v14, 8 }
  0x97   :  { %vm106_vm2 = vcmp.gt.s32.totalorder %v105_v9, 0  ;;  %v144_v46 = vand.u32 65535, %v586_v37  ;;  %v145_v47 = vshrl.u32 %v586_v37, 16 }
  0x98   :  { %v107_v11 = vsel %vm106_vm2, %v105_v9, 0 }
  0x99   :  { %v109_v12 = vand.u32 31, %v107_v11  ;;  %v577_v15 = vshrl.u32 %v107_v11, 5 }
  0x9b   :  { %v575_v13 = vsub.s32 32, %v109_v12  ;;  %v112_v17 = vshll.u32 %v529_v16, %v109_v12  ;;  %v115_v19 = vshll.u32 %v530_v18, %v109_v12  ;;  %v118_v23 = vshll.u32 %v531_v21, %v109_v12 }
  0x9c   :  { %v121_v26 = vshll.u32 %v532_v24, %v109_v12  ;;  %v124_v29 = vshll.u32 %v533_v27, %v109_v12  ;;  %vm127_vm3 = vcmp.lt.s32.totalorder %v577_v15, 1  ;;  %vm130_vm4 = vcmp.lt.s32.totalorder %v577_v15, 4 }
  0x9d   :  { %v113_v20 = vshrl.u32 %v530_v18, %v575_v13  ;;  %v116_v22 = vshrl.u32 %v531_v21, %v575_v13  ;;  %v119_v25 = vshrl.u32 %v532_v24, %v575_v13  ;;  %v122_v28 = vshrl.u32 %v533_v27, %v575_v13 }
  0x9e   :  { %v125_v31 = vshrl.u32 %v534_v30, %v575_v13  ;;  %vm129_vm5 = vcmp.lt.s32.totalorder %v577_v15, 3  ;;  %vm128_vm6 = vcmp.lt.s32.totalorder %v577_v15, 2  ;;  %v111_v11 = vshrl.u32 %v529_v16, %v575_v13 }
  0x9f   :  { %v114_v32 = vor.u32 %v113_v20, %v112_v17  ;;  %v117_v33 = vor.u32 %v116_v22, %v115_v19  ;;  %v120_v34 = vor.u32 %v119_v25, %v118_v23  ;;  %v123_v35 = vor.u32 %v122_v28, %v121_v26 }
  0xa0   :  { %v126_v36 = vor.u32 %v125_v31, %v124_v29 }
  0xa1   :  { %v135_v38 = vsel %vm127_vm3, %v114_v32, %v117_v33  ;;  %v139_v39 = vsel %vm127_vm3, %v117_v33, %v120_v34  ;;  %v136_v40 = vsel %vm130_vm4, %v123_v35, 920167782  ;;  %v132_v7 = vsel %vm130_vm4, %v120_v34, 2102212464 }
  0xa2   :  { %v140_v41 = vsel %vm130_vm4, %v126_v36, 1326507024  ;;  %v137_v42 = vsel %vm129_vm5, %v120_v34, %v136_v40  ;;  %v131_v20 = vsel %vm127_vm3, %v111_v11, %v114_v32  ;;  %v133_v21 = vsel %vm129_vm5, %v117_v33, %v132_v7 }
  0xa3   :  { %v141_v43 = vsel %vm129_vm5, %v123_v35, %v140_v41  ;;  %v138_v44 = vsel %vm128_vm6, %v135_v38, %v137_v42  ;;  %v134_v13 = vsel %vm128_vm6, %v131_v20, %v133_v21 }
  0xa4   :  { %v142_v45 = vsel %vm128_vm6, %v139_v39, %v141_v43  ;;  %v168_v50 = vand.u32 65535, %v138_v44  ;;  %v169_v51 = vshrl.u32 %v138_v44, 16  ;;  %v188_v29 = vmul.u32 %v586_v37, %v134_v13 }
  0xa5   :  { %v146_v48 = vand.u32 65535, %v142_v45  ;;  %v147_v49 = vshrl.u32 %v142_v45, 16 }
  0xa6   :  { %v171_v54 = vmul.u32 %v169_v51, %v144_v46  ;;  %v172_v55 = vmul.u32 %v168_v50, %v145_v47  ;;  %v170_v59 = vmul.u32 %v168_v50, %v144_v46  ;;  %v173_v63 = vmul.u32 %v169_v51, %v145_v47 }
  0xa7   :  { %v149_v52 = vmul.u32 %v147_v49, %v144_v46  ;;  %v150_v53 = vmul.u32 %v146_v48, %v145_v47  ;;  %v148_v56 = vmul.u32 %v146_v48, %v144_v46  ;;  %v151_v58 = vmul.u32 %v147_v49, %v145_v47 }
  0xa8   :  { %v174_v60 = vshll.u32 %v171_v54, 16  ;;  %v176_v2 = vshll.u32 %v172_v55, 16  ;;  %v175_v18 = vshrl.u32 %v171_v54, 16  ;;  %v177_v24 = vshrl.u32 %v172_v55, 16 }
  0xa9   :  { %v152_v57 = vshll.u32 %v149_v52, 16  ;;  %v154_v61 = vshll.u32 %v150_v53, 16  ;;  %v153_v12 = vshrl.u32 %v149_v52, 16  ;;  %v155_v22 = vshrl.u32 %v150_v53, 16 }
  0xaa   :  { %vm178_vm8 = vc.u32 %v170_v59, %v174_v60  ;;  %v180_v3 = vadd.s32 %v174_v60, %v170_v59  ;;  %v80_v60 = vlaneseq }
  0xab   :  { %vm156_vm7 = vc.u32 %v148_v56, %v152_v57  ;;  %v158_v62 = vadd.s32 %v152_v57, %v148_v56  ;;  %v179_v6 = vsel %vm178_vm8, 1, %v535_v0 }
  0xac   :  { %v157_v1 = vsel %vm156_vm7, 1, %v535_v0  ;;  %v181_v10 = vadd.s32 %v179_v6, %v173_v63  ;;  %vm182_vm10 = vc.u32 %v180_v3, %v176_v2  ;;  %v184_v27 = vadd.s32 %v180_v3, %v176_v2 }
  0xad   :  { %v159_v5 = vadd.s32 %v157_v1, %v151_v58  ;;  %vm160_vm9 = vc.u32 %v158_v62, %v154_v61  ;;  %v183_v17 = vsel %vm182_vm10, 1, %v535_v0  ;;  %v81_v2 = vand.u32 127, %v80_v60 }
  0xae   :  { %v161_v9 = vsel %vm160_vm9, 1, %v535_v0  ;;  %v185_v19 = vadd.s32 %v183_v17, %v181_v10  ;;  %vm238_vm7 = vweird.f32 %v569_v4 }
  0xaf   :  { %v163_v14 = vadd.s32 %v161_v9, %v159_v5  ;;  %v86_v9 = vand.u32 31, %v81_v2 }
  0xb0   :  { %v186_v25 = vadd.s32 %v185_v19, %v175_v18 }
  0xb1   :  { %v164_v23 = vadd.s32 %v163_v14, %v153_v12  ;;  %vm624_vm0 = vcmp.lt.s32.totalorder %v86_v9, 16 }
  0xb2   :  { %v187_v16 = vadd.s32 %v186_v25, %v177_v24 }
  0xb3   :  { %v165_v26 = vadd.s32 %v164_v23, %v155_v22 }
  0xb4   :  { %v191_v28 = vadd.s32 1, %v187_v16 }
  0xb5   :  { %vm190_vm11 = vc.u32 %v165_v26, %v184_v27  ;;  %v189_v15 = vadd.s32 %v184_v27, %v165_v26 }
  0xb6   :  { %v192_v30 = vsel %vm190_vm11, %v191_v28, %v187_v16 }
  0xb7   :  { %v193_v31 = vadd.s32 %v192_v30, %v188_v29 }
  0xb9   :  { %v194_v32 = vadd.s32 536870912, %v193_v31 }
  0xbb   :  { %v195_v34 = vshrl.u32 %v194_v32, 30 }
  0xbd   :  { %v196_v35 = vshll.u32 %v195_v34, 30  ;;  %v219_v54 = vsub.s32 4, %v195_v34 }
  0xbf   :  { %v197_v33 = vsub.s32 %v193_v31, %v196_v35  ;;  %v220_v59 = vsel %vm97_vm14, %v219_v54, %v195_v34 }
  0xc0   :  { %v222_v63 = vsel %vm96_vm15, 0, %v220_v59 }
  0xc1   :  { %vm198_vm12 = vcmp.lt.s32.totalorder %v197_v33, 0  ;;  %v199_v36 = vsub.s32 0, %v197_v33  ;;  %v239_v6 = vadd.s32 3, %v222_v63  ;;  %v394_v12 = vand.u32 3, %v222_v63 }
  0xc3   :  { %v200_v38 = vsel %vm198_vm12, %v199_v36, %v197_v33  ;;  %v240_v14 = vand.u32 3, %v239_v6  ;;  %vm395_vm1 = vcmp.lt.s32.totalorder %v394_v12, 2  ;;  %vm396_vm2 = vcmp.eq.s32.totalorder %v394_v12, 0 }
  0xc4   :  { %v201_v39 = vclz %v200_v38  ;;  %vm399_vm6 = vcmp.eq.s32.totalorder %v394_v12, 2 }
  0xc5   :  { %vm241_vm3 = vcmp.lt.s32.totalorder %v240_v14, 2  ;;  %vm242_vm4 = vcmp.eq.s32.totalorder %v240_v14, 0  ;;  %vm245_vm5 = vcmp.eq.s32.totalorder %v240_v14, 2 }
  0xc6   :  { %v429_v40 = vadd.s32 4294967294, %v201_v39 }
  0xc8   :  { %vm430_vm13 = vcmp.lt.s32.totalorder %v429_v40, 0 }
  0xc9   :  { %v204_v41 = vsel %vm430_vm13, 0, %v429_v40 }
  0xca   :  { %v205_v42 = vsub.s32 32, %v204_v41  ;;  %v209_v43 = vsub.s32 4294967266, %v204_v41  ;;  %v206_v44 = vshll.u32 %v197_v33, %v204_v41 }
  0xcc   :  { %v207_v45 = vshrl.u32 %v189_v15, %v205_v42  ;;  %v210_v46 = vadd.s32 127, %v209_v43 }
  0xce   :  { %v208_v37 = vor.u32 %v207_v45, %v206_v44  ;;  %v211_v47 = vshll.u32 %v210_v46, 23 }
  0xd0   :  { %v212_v48 = vor.u32 4788187, %v211_v47  ;;  %v215_v50 = vcvt.s32.f32 %v208_v37 }
  0xd2   :  { %v213_v49 = vand.u32 2147483647, %v212_v48 }
  0xd4   :  { %v216_v51 = vmul.f32 %v215_v50, %v213_v49 }
  0xd6   :  { %v217_v52 = vxor.u32 2147483648, %v216_v51 }
  0xd8   :  { %v218_v53 = vsel %vm97_vm14, %v217_v52, %v216_v51 }
  0xd9   :  { %v221_v55 = vsel %vm96_vm15, %v569_v4, %v218_v53 }
  0xda   :  { %v223_v56 = vmul.f32 %v221_v55, %v221_v55 }
  0xdc   :  { %v224_v57 = vmul.f32 -0.001358992, %v223_v56  ;;  %v231_v58 = vmul.f32 -0.00019511016, %v223_v56 }
  0xde   :  { %v225_v61 = vadd.f32 0.041655596, %v224_v57  ;;  %v232_v62 = vadd.f32 0.008332121, %v231_v58 }
  0xe0   :  { %v226_v0 = vmul.f32 %v225_v61, %v223_v56  ;;  %v233_v1 = vmul.f32 %v232_v62, %v223_v56 }
  0xe2   :  { %v227_v3 = vadd.f32 -0.4999988, %v226_v0  ;;  %v234_v5 = vadd.f32 -0.16666654, %v233_v1 }
  0xe4   :  { %v228_v7 = vmul.f32 %v227_v3, %v223_v56  ;;  %v235_v8 = vmul.f32 %v234_v5, %v223_v56 }
  0xe6   :  { %v229_v10 = vadd.f32 1.0, %v228_v7  ;;  %v236_v11 = vadd.f32 1.0, %v235_v8 }
  0xe8   :  { %v237_v17 = vmul.f32 %v236_v11, %v221_v55  ;;  %v246_v18 = vxor.u32 2147483648, %v229_v10 }
  0xea   :  { %v243_v20 = vxor.u32 2147483648, %v237_v17  ;;  %v247_v22 = vsel %vm245_vm5, %v246_v18, %v237_v17  ;;  %v401_v24 = vsel %vm399_vm6, %v246_v18, %v237_v17 }
  0xec   :  { %v244_v21 = vsel %vm242_vm4, %v229_v10, %v243_v20  ;;  %v398_v23 = vsel %vm396_vm2, %v229_v10, %v243_v20 }
  0xed   :  { %v248_v25 = vsel %vm241_vm3, %v244_v21, %v247_v22  ;;  %v402_v26 = vsel %vm395_vm1, %v398_v23, %v401_v24 }
  0xee   :  { %v249_v27 = vsel %vm238_vm7, nan, %v248_v25  ;;  %v403_v13 = vsel %vm238_vm7, nan, %v402_v26 }
  0xef   :  { %v404_v16 = vsel %vm624_vm0, %v249_v27, %v403_v13 }
  0xf0   :  { %405 = vst [vmem:[#allocation7] sm:$0xff] %v404_v16 }
  0xf1   :  { %409 = vsyncadd [#allocation4], 96  ;;  %s412_s25 = sshll.u32 %s640_s3, 4  ;;  %s536_s26 = smov [#allocation7]   ;;  %s413_s25 = int_to_ptr.hbm [resolvable:$true] %s412_s25 }
  0xf2   :  { %s410_s27 = sshll.u32 %s536_s26, 4  ;;  %s411_s27 = int_to_ptr.vmem [resolvable:$true] %s410_s27 }
  0xf3   :  { %418 = dma.vmem_to_hbm [thread:$0]  %s411_s27, 32, %s413_s25, [#allocation4], %s526_s20, %s526_s20, %s527_s21  }
  0xf4   :  { %523 = dma.done.wait [#allocation4], 128  }
  0xf5   :  { %524 = vsyncadd [#allocation4], 4294967168 }
  0xf6   :  { %423 = vsyncpa [#allocation3], 1 }
  0xf7   :  { %424 = vsyncpa [#allocation6], 1 }
  0xf8   :  { %425 = vsyncpa [#allocation4], 1 }

</bundles_post_ra>
